<compile_context>
chip_gen: v7x
topology: tpu7x:2x2x1
jax: 0.10.0
libtpu: 0.0.40
codegen_flags: <defaults>
</compile_context>

<pallas_src>
import functools

import jax
import jax.numpy as jnp
import numpy as np
from jax import lax
from jax.experimental import pallas as pl
from jax.experimental.pallas import tpu as pltpu


# ---------------------------------------------------------------------------
# Kernel
# ---------------------------------------------------------------------------
def lstm_classifier_kernel(x_ref, wihf_ref, wihb_ref, whh_ref, b_ref,
                           wout_ref, bout_ref, out_ref, *, T, H):
    """Fused bidirectional LSTM + linear head, batch=1.

    x_ref    : (T, E)       input sequence
    wihf_ref : (E, 8H)      forward input->gate weights scattered into fused
                            gate layout (zeros in backward columns)
    wihb_ref : (E, 8H)      backward input->gate weights (zeros in fwd columns)
    whh_ref  : (2H, 8H)     block-structured recurrent weights (both dirs)
    b_ref    : (1, 8H)      fused biases (b_ih + b_hh, both dirs)
    wout_ref : (2H, Cp)     output linear weights, lane-padded to Cp (mult of 128)
    bout_ref : (1, Cp)      output linear bias, lane-padded
    out_ref  : (1, Cp)
    Fused gate column layout: [i_f i_b f_f f_b o_f o_b g_f g_b]
    State layout:             h = [h_f h_b], c = [c_f c_b]   (1, 2H)
    """
    H2, H4, H6, H8 = 2 * H, 4 * H, 6 * H, 8 * H

    x = x_ref[...]                                   # (T, E)
    whh = whh_ref[...]                               # (2H, 8H)

    # --- one-shot input projections for both directions (bias folded in) ----
    gin_f = (jnp.dot(x, wihf_ref[...], preferred_element_type=jnp.float32)
             + b_ref[...])                           # (T, 8H) fwd cols + bias
    gin_b = jnp.dot(x, wihb_ref[...],
                    preferred_element_type=jnp.float32)  # (T, 8H) bwd cols

    def gate_split(gates):
        sg = jax.nn.sigmoid(gates[:, :H6])           # [i_f i_b f_f f_b o_f o_b]
        g = jnp.tanh(gates[:, H6:H8])                # [g_f g_b]
        return sg[:, :H2], sg[:, H2:H4], sg[:, H4:H6], g

    # --- peeled t = 0 : h0 = c0 = 0  (no recurrent matmul, no f*c term) -----
    gates = gin_f[0:1, :] + gin_b[T - 1:T, :]
    i, _, o, g = gate_split(gates)
    c = i * g
    h = o * jnp.tanh(c)

    # --- remaining steps, fully unrolled (T is static) ----------------------
    for t in range(1, T):
        gates = (gin_f[t:t + 1, :] + gin_b[T - 1 - t:T - t, :]
                 + jnp.dot(h, whh, preferred_element_type=jnp.float32))
        i, f, o, g = gate_split(gates)
        c = f * c + i * g
        h = o * jnp.tanh(c)

    # --- final linear head: h == [h_f_final ; h_b_final]  (1, 2H) -----------
    out_ref[...] = (jnp.dot(h, wout_ref[...], preferred_element_type=jnp.float32)
                    + bout_ref[...])


# ---------------------------------------------------------------------------
# Parameters (PyTorch-style layout) + host-side fused-weight construction
# ---------------------------------------------------------------------------
def make_params(key, embed_size, nHidden, nClasses):
    """uniform(-1/sqrt(H), 1/sqrt(H)) init like PyTorch; PyTorch gate order
    [i, f, g, o]; weights stored pre-transposed (input-dim first)."""
    k = 1.0 / np.sqrt(nHidden)
    keys = jax.random.split(key, 10)
    u = lambda kk, shape: jax.random.uniform(kk, shape, jnp.float32, -k, k)
    H4 = 4 * nHidden
    return dict(
        embed_size=embed_size,
        nHidden=nHidden,
        wih_f=u(keys[0], (embed_size, H4)),
        whh_f=u(keys[1], (nHidden, H4)),
        b_f=(u(keys[2], (1, H4)) + u(keys[3], (1, H4))),     # b_ih + b_hh
        wih_b=u(keys[4], (embed_size, H4)),
        whh_b=u(keys[5], (nHidden, H4)),
        b_b=(u(keys[6], (1, H4)) + u(keys[7], (1, H4))),
        wout=u(keys[8], (2 * nHidden, nClasses)),
        bout=u(keys[9], (1, nClasses)),
    )


def fuse_params(params):
    """Build the fused-gate-layout weights used by the kernel (done once,
    host-side).  Fused column layout: [i_f i_b f_f f_b o_f o_b g_f g_b]."""
    E = params["embed_size"]
    H = params["nHidden"]

    def split4(w):  # PyTorch column order [i, f, g, o], each H wide
        return w[..., 0:H], w[..., H:2 * H], w[..., 2 * H:3 * H], w[..., 3 * H:4 * H]

    i_f, f_f, g_f, o_f = split4(params["wih_f"])
    i_b, f_b, g_b, o_b = split4(params["wih_b"])
    Z_E = jnp.zeros((E, H), jnp.float32)
    wihf_pad = jnp.concatenate([i_f, Z_E, f_f, Z_E, o_f, Z_E, g_f, Z_E], axis=1)
    wihb_pad = jnp.concatenate([Z_E, i_b, Z_E, f_b, Z_E, o_b, Z_E, g_b], axis=1)

    hi_f, hf_f, hg_f, ho_f = split4(params["whh_f"])
    hi_b, hf_b, hg_b, ho_b = split4(params["whh_b"])
    Z_H = jnp.zeros((H, H), jnp.float32)
    whh_top = jnp.concatenate([hi_f, Z_H, hf_f, Z_H, ho_f, Z_H, hg_f, Z_H], axis=1)
    whh_bot = jnp.concatenate([Z_H, hi_b, Z_H, hf_b, Z_H, ho_b, Z_H, hg_b], axis=1)
    whh_fused = jnp.concatenate([whh_top, whh_bot], axis=0)        # (2H, 8H)

    bi_f, bf_f, bg_f, bo_f = split4(params["b_f"])
    bi_b, bf_b, bg_b, bo_b = split4(params["b_b"])
    b_fused = jnp.concatenate(
        [bi_f, bi_b, bf_f, bf_b, bo_f, bo_b, bg_f, bg_b], axis=1)  # (1, 8H)

    # Lane-dense classifier head: zero-pad the class dim to a multiple of 128
    # so the kernel's final store is a full, unmasked vst.
    C = params["wout"].shape[-1]
    C_pad = max(128, int(-(-C // 128)) * 128)
    wout_pad = jnp.pad(params["wout"], ((0, 0), (0, C_pad - C)))   # (2H, Cp)
    bout_pad = jnp.pad(params["bout"], ((0, 0), (0, C_pad - C)))   # (1, Cp)

    return wihf_pad, wihb_pad, whh_fused, b_fused, wout_pad, bout_pad, C_pad


# ---------------------------------------------------------------------------
# Wrapper
# ---------------------------------------------------------------------------
def vanila_lstm_classifier_forward(in_seq, params):
    E = params["embed_size"]
    H = params["nHidden"]
    C = params["bout"].shape[-1]
    x = in_seq.reshape(-1, E).astype(jnp.float32)    # (T, E), batch = 1
    T = x.shape[0]

    (wihf_pad, wihb_pad, whh_fused, b_fused,
     wout_pad, bout_pad, C_pad) = fuse_params(params)

    vmem = pl.BlockSpec(memory_space=pltpu.MemorySpace.VMEM)
    kernel = functools.partial(lstm_classifier_kernel, T=T, H=H)
    # TODO(synk): on v7x the two directions could instead be split across the
    # two TensorCores (pl.core_map); the fused single-core path is kept for
    # portability across v5e/v6e/v7x.
    out_pad = pl.pallas_call(
        kernel,
        out_shape=jax.ShapeDtypeStruct((1, C_pad), jnp.float32),
        in_specs=[vmem] * 7,
        out_specs=vmem,
    )(x, wihf_pad, wihb_pad, whh_fused, b_fused, wout_pad, bout_pad)
    return out_pad[:, :C]                            # (1, nClasses)


# ---------------------------------------------------------------------------
# Pure-JAX reference (PyTorch semantics, unfused layout)
# ---------------------------------------------------------------------------
def reference_forward(in_seq, params):
    E = params["embed_size"]
    H = params["nHidden"]
    x = in_seq.reshape(-1, E).astype(jnp.float32)

    def make_step(wih, whh, b):
        def step(carry, x_t):
            h, c = carry
            gates = x_t @ wih + h @ whh + b[0]
            i = jax.nn.sigmoid(gates[0 * H:1 * H])
            f = jax.nn.sigmoid(gates[1 * H:2 * H])
            g = jnp.tanh(gates[2 * H:3 * H])
            o = jax.nn.sigmoid(gates[3 * H:4 * H])
            c = f * c + i * g
            h = o * jnp.tanh(c)
            return (h, c), h
        return step

    h0 = jnp.zeros((H,), jnp.float32)
    c0 = jnp.zeros((H,), jnp.float32)
    (hf, _), _ = lax.scan(make_step(params["wih_f"], params["whh_f"], params["b_f"]),
                          (h0, c0), x)
    (hb, _), _ = lax.scan(make_step(params["wih_b"], params["whh_b"], params["b_b"]),
                          (h0, c0), x[::-1])
    hidden = jnp.concatenate([hf, hb])                  # (2H,)
    out = hidden @ params["wout"] + params["bout"][0]   # (C,)
    return out.reshape(1, -1)


if __name__ == "__main__":
    embed_size, nHidden, nClasses, T = 16, 32, 8, 8

    key = jax.random.PRNGKey(0)
    k_in, k_par = jax.random.split(key)
    in_seq = jax.random.normal(k_in, (T, embed_size), jnp.float32)  # viewed as (T,1,E)
    params = make_params(k_par, embed_size, nHidden, nClasses)

    out = vanila_lstm_classifier_forward(in_seq, params)
    out = jax.block_until_ready(out)

    ref = reference_forward(in_seq, params)
    assert out.shape == (1, nClasses), out.shape
    np.testing.assert_allclose(np.asarray(out), np.asarray(ref), rtol=1e-5, atol=1e-5)

    print("KERNEL_OK")
</pallas_src>

<mosaic_0001>
module attributes {stable_mosaic.version = 11 : i64} {
  func.func @lstm_classifier_kernel(%arg0: memref<8x16xf32, #tpu.memory_space<vmem>>, %arg1: memref<16x256xf32, #tpu.memory_space<vmem>>, %arg2: memref<16x256xf32, #tpu.memory_space<vmem>>, %arg3: memref<64x256xf32, #tpu.memory_space<vmem>>, %arg4: memref<1x256xf32, #tpu.memory_space<vmem>>, %arg5: memref<64x128xf32, #tpu.memory_space<vmem>>, %arg6: memref<1x128xf32, #tpu.memory_space<vmem>>, %arg7: memref<1x128xf32, #tpu.memory_space<vmem>>) attributes {dimension_semantics = [], scalar_prefetch = 0 : i64, scratch_operands = 0 : i64, tpu.core_type = #tpu.core_type<tc>} {
    %c0 = arith.constant 0 : index
    %c0_0 = arith.constant 0 : index
    %0 = vector.load %arg0[%c0, %c0_0] : memref<8x16xf32, #tpu.memory_space<vmem>>, vector<8x16xf32>
    %c0_1 = arith.constant 0 : index
    %c0_2 = arith.constant 0 : index
    %1 = vector.load %arg3[%c0_1, %c0_2] : memref<64x256xf32, #tpu.memory_space<vmem>>, vector<64x256xf32>
    %c0_3 = arith.constant 0 : index
    %c0_4 = arith.constant 0 : index
    %2 = vector.load %arg1[%c0_3, %c0_4] : memref<16x256xf32, #tpu.memory_space<vmem>>, vector<16x256xf32>
    %cst = arith.constant dense<0.000000e+00> : vector<8x256xf32>
    %3 = tpu.matmul %0, %2, %cst {dimension_numbers = #tpu.dot_dimension_numbers<[1], [0], [0], [1], [0, 0, 1, 1], [], []>} : vector<8x16xf32>, vector<16x256xf32>, vector<8x256xf32> -> vector<8x256xf32>
    %c0_5 = arith.constant 0 : index
    %c0_6 = arith.constant 0 : index
    %4 = vector.load %arg4[%c0_5, %c0_6] : memref<1x256xf32, #tpu.memory_space<vmem>>, vector<1x256xf32>
    %5 = vector.broadcast %4 : vector<1x256xf32> to vector<8x256xf32>
    %6 = arith.addf %3, %5 : vector<8x256xf32>
    %c0_7 = arith.constant 0 : index
    %c0_8 = arith.constant 0 : index
    %7 = vector.load %arg2[%c0_7, %c0_8] : memref<16x256xf32, #tpu.memory_space<vmem>>, vector<16x256xf32>
    %cst_9 = arith.constant dense<0.000000e+00> : vector<8x256xf32>
    %8 = tpu.matmul %0, %7, %cst_9 {dimension_numbers = #tpu.dot_dimension_numbers<[1], [0], [0], [1], [0, 0, 1, 1], [], []>} : vector<8x16xf32>, vector<16x256xf32>, vector<8x256xf32> -> vector<8x256xf32>
    %9 = vector.extract_strided_slice %6 {offsets = [0, 0], sizes = [1, 256], strides = [1, 1]} : vector<8x256xf32> to vector<1x256xf32>
    %10 = vector.extract_strided_slice %8 {offsets = [7, 0], sizes = [1, 256], strides = [1, 1]} : vector<8x256xf32> to vector<1x256xf32>
    %11 = arith.addf %9, %10 : vector<1x256xf32>
    %12 = vector.extract_strided_slice %11 {offsets = [0, 0], sizes = [1, 192], strides = [1, 1]} : vector<1x256xf32> to vector<1x192xf32>
    %13 = arith.negf %12 : vector<1x192xf32>
    %14 = math.exp %13 : vector<1x192xf32>
    %cst_10 = arith.constant 1.000000e+00 : f32
    %15 = vector.broadcast %cst_10 : f32 to vector<1x192xf32>
    %16 = arith.addf %15, %14 : vector<1x192xf32>
    %17 = arith.divf %15, %16 : vector<1x192xf32>
    %18 = vector.extract_strided_slice %11 {offsets = [0, 192], sizes = [1, 64], strides = [1, 1]} : vector<1x256xf32> to vector<1x64xf32>
    %19 = math.tanh %18 : vector<1x64xf32>
    %20 = vector.extract_strided_slice %17 {offsets = [0, 0], sizes = [1, 64], strides = [1, 1]} : vector<1x192xf32> to vector<1x64xf32>
    %21 = vector.extract_strided_slice %17 {offsets = [0, 128], sizes = [1, 64], strides = [1, 1]} : vector<1x192xf32> to vector<1x64xf32>
    %22 = arith.mulf %20, %19 : vector<1x64xf32>
    %23 = math.tanh %22 : vector<1x64xf32>
    %24 = arith.mulf %21, %23 : vector<1x64xf32>
    %25 = vector.extract_strided_slice %6 {offsets = [1, 0], sizes = [1, 256], strides = [1, 1]} : vector<8x256xf32> to vector<1x256xf32>
    %26 = vector.extract_strided_slice %8 {offsets = [6, 0], sizes = [1, 256], strides = [1, 1]} : vector<8x256xf32> to vector<1x256xf32>
    %27 = arith.addf %25, %26 : vector<1x256xf32>
    %cst_11 = arith.constant dense<0.000000e+00> : vector<1x256xf32>
    %28 = tpu.matmul %24, %1, %cst_11 {dimension_numbers = #tpu.dot_dimension_numbers<[1], [0], [0], [1], [0, 0, 1, 1], [], []>} : vector<1x64xf32>, vector<64x256xf32>, vector<1x256xf32> -> vector<1x256xf32>
    %29 = arith.addf %27, %28 : vector<1x256xf32>
    %30 = vector.extract_strided_slice %29 {offsets = [0, 0], sizes = [1, 192], strides = [1, 1]} : vector<1x256xf32> to vector<1x192xf32>
    %31 = arith.negf %30 : vector<1x192xf32>
    %32 = math.exp %31 : vector<1x192xf32>
    %cst_12 = arith.constant 1.000000e+00 : f32
    %33 = vector.broadcast %cst_12 : f32 to vector<1x192xf32>
    %34 = arith.addf %33, %32 : vector<1x192xf32>
    %35 = arith.divf %33, %34 : vector<1x192xf32>
    %36 = vector.extract_strided_slice %29 {offsets = [0, 192], sizes = [1, 64], strides = [1, 1]} : vector<1x256xf32> to vector<1x64xf32>
    %37 = math.tanh %36 : vector<1x64xf32>
    %38 = vector.extract_strided_slice %35 {offsets = [0, 0], sizes = [1, 64], strides = [1, 1]} : vector<1x192xf32> to vector<1x64xf32>
    %39 = vector.extract_strided_slice %35 {offsets = [0, 64], sizes = [1, 64], strides = [1, 1]} : vector<1x192xf32> to vector<1x64xf32>
    %40 = vector.extract_strided_slice %35 {offsets = [0, 128], sizes = [1, 64], strides = [1, 1]} : vector<1x192xf32> to vector<1x64xf32>
    %41 = arith.mulf %39, %22 : vector<1x64xf32>
    %42 = arith.mulf %38, %37 : vector<1x64xf32>
    %43 = arith.addf %41, %42 : vector<1x64xf32>
    %44 = math.tanh %43 : vector<1x64xf32>
    %45 = arith.mulf %40, %44 : vector<1x64xf32>
    %46 = vector.extract_strided_slice %6 {offsets = [2, 0], sizes = [1, 256], strides = [1, 1]} : vector<8x256xf32> to vector<1x256xf32>
    %47 = vector.extract_strided_slice %8 {offsets = [5, 0], sizes = [1, 256], strides = [1, 1]} : vector<8x256xf32> to vector<1x256xf32>
    %48 = arith.addf %46, %47 : vector<1x256xf32>
    %cst_13 = arith.constant dense<0.000000e+00> : vector<1x256xf32>
    %49 = tpu.matmul %45, %1, %cst_13 {dimension_numbers = #tpu.dot_dimension_numbers<[1], [0], [0], [1], [0, 0, 1, 1], [], []>} : vector<1x64xf32>, vector<64x256xf32>, vector<1x256xf32> -> vector<1x256xf32>
    %50 = arith.addf %48, %49 : vector<1x256xf32>
    %51 = vector.extract_strided_slice %50 {offsets = [0, 0], sizes = [1, 192], strides = [1, 1]} : vector<1x256xf32> to vector<1x192xf32>
    %52 = arith.negf %51 : vector<1x192xf32>
    %53 = math.exp %52 : vector<1x192xf32>
    %cst_14 = arith.constant 1.000000e+00 : f32
    %54 = vector.broadcast %cst_14 : f32 to vector<1x192xf32>
    %55 = arith.addf %54, %53 : vector<1x192xf32>
    %56 = arith.divf %54, %55 : vector<1x192xf32>
    %57 = vector.extract_strided_slice %50 {offsets = [0, 192], sizes = [1, 64], strides = [1, 1]} : vector<1x256xf32> to vector<1x64xf32>
    %58 = math.tanh %57 : vector<1x64xf32>
    %59 = vector.extract_strided_slice %56 {offsets = [0, 0], sizes = [1, 64], strides = [1, 1]} : vector<1x192xf32> to vector<1x64xf32>
    %60 = vector.extract_strided_slice %56 {offsets = [0, 64], sizes = [1, 64], strides = [1, 1]} : vector<1x192xf32> to vector<1x64xf32>
    %61 = vector.extract_strided_slice %56 {offsets = [0, 128], sizes = [1, 64], strides = [1, 1]} : vector<1x192xf32> to vector<1x64xf32>
    %62 = arith.mulf %60, %43 : vector<1x64xf32>
    %63 = arith.mulf %59, %58 : vector<1x64xf32>
    %64 = arith.addf %62, %63 : vector<1x64xf32>
    %65 = math.tanh %64 : vector<1x64xf32>
    %66 = arith.mulf %61, %65 : vector<1x64xf32>
    %67 = vector.extract_strided_slice %6 {offsets = [3, 0], sizes = [1, 256], strides = [1, 1]} : vector<8x256xf32> to vector<1x256xf32>
    %68 = vector.extract_strided_slice %8 {offsets = [4, 0], sizes = [1, 256], strides = [1, 1]} : vector<8x256xf32> to vector<1x256xf32>
    %69 = arith.addf %67, %68 : vector<1x256xf32>
    %cst_15 = arith.constant dense<0.000000e+00> : vector<1x256xf32>
    %70 = tpu.matmul %66, %1, %cst_15 {dimension_numbers = #tpu.dot_dimension_numbers<[1], [0], [0], [1], [0, 0, 1, 1], [], []>} : vector<1x64xf32>, vector<64x256xf32>, vector<1x256xf32> -> vector<1x256xf32>
    %71 = arith.addf %69, %70 : vector<1x256xf32>
    %72 = vector.extract_strided_slice %71 {offsets = [0, 0], sizes = [1, 192], strides = [1, 1]} : vector<1x256xf32> to vector<1x192xf32>
    %73 = arith.negf %72 : vector<1x192xf32>
    %74 = math.exp %73 : vector<1x192xf32>
    %cst_16 = arith.constant 1.000000e+00 : f32
    %75 = vector.broadcast %cst_16 : f32 to vector<1x192xf32>
    %76 = arith.addf %75, %74 : vector<1x192xf32>
    %77 = arith.divf %75, %76 : vector<1x192xf32>
    %78 = vector.extract_strided_slice %71 {offsets = [0, 192], sizes = [1, 64], strides = [1, 1]} : vector<1x256xf32> to vector<1x64xf32>
    %79 = math.tanh %78 : vector<1x64xf32>
    %80 = vector.extract_strided_slice %77 {offsets = [0, 0], sizes = [1, 64], strides = [1, 1]} : vector<1x192xf32> to vector<1x64xf32>
    %81 = vector.extract_strided_slice %77 {offsets = [0, 64], sizes = [1, 64], strides = [1, 1]} : vector<1x192xf32> to vector<1x64xf32>
    %82 = vector.extract_strided_slice %77 {offsets = [0, 128], sizes = [1, 64], strides = [1, 1]} : vector<1x192xf32> to vector<1x64xf32>
    %83 = arith.mulf %81, %64 : vector<1x64xf32>
    %84 = arith.mulf %80, %79 : vector<1x64xf32>
    %85 = arith.addf %83, %84 : vector<1x64xf32>
    %86 = math.tanh %85 : vector<1x64xf32>
    %87 = arith.mulf %82, %86 : vector<1x64xf32>
    %88 = vector.extract_strided_slice %6 {offsets = [4, 0], sizes = [1, 256], strides = [1, 1]} : vector<8x256xf32> to vector<1x256xf32>
    %89 = vector.extract_strided_slice %8 {offsets = [3, 0], sizes = [1, 256], strides = [1, 1]} : vector<8x256xf32> to vector<1x256xf32>
    %90 = arith.addf %88, %89 : vector<1x256xf32>
    %cst_17 = arith.constant dense<0.000000e+00> : vector<1x256xf32>
    %91 = tpu.matmul %87, %1, %cst_17 {dimension_numbers = #tpu.dot_dimension_numbers<[1], [0], [0], [1], [0, 0, 1, 1], [], []>} : vector<1x64xf32>, vector<64x256xf32>, vector<1x256xf32> -> vector<1x256xf32>
    %92 = arith.addf %90, %91 : vector<1x256xf32>
    %93 = vector.extract_strided_slice %92 {offsets = [0, 0], sizes = [1, 192], strides = [1, 1]} : vector<1x256xf32> to vector<1x192xf32>
    %94 = arith.negf %93 : vector<1x192xf32>
    %95 = math.exp %94 : vector<1x192xf32>
    %cst_18 = arith.constant 1.000000e+00 : f32
    %96 = vector.broadcast %cst_18 : f32 to vector<1x192xf32>
    %97 = arith.addf %96, %95 : vector<1x192xf32>
    %98 = arith.divf %96, %97 : vector<1x192xf32>
    %99 = vector.extract_strided_slice %92 {offsets = [0, 192], sizes = [1, 64], strides = [1, 1]} : vector<1x256xf32> to vector<1x64xf32>
    %100 = math.tanh %99 : vector<1x64xf32>
    %101 = vector.extract_strided_slice %98 {offsets = [0, 0], sizes = [1, 64], strides = [1, 1]} : vector<1x192xf32> to vector<1x64xf32>
    %102 = vector.extract_strided_slice %98 {offsets = [0, 64], sizes = [1, 64], strides = [1, 1]} : vector<1x192xf32> to vector<1x64xf32>
    %103 = vector.extract_strided_slice %98 {offsets = [0, 128], sizes = [1, 64], strides = [1, 1]} : vector<1x192xf32> to vector<1x64xf32>
    %104 = arith.mulf %102, %85 : vector<1x64xf32>
    %105 = arith.mulf %101, %100 : vector<1x64xf32>
    %106 = arith.addf %104, %105 : vector<1x64xf32>
    %107 = math.tanh %106 : vector<1x64xf32>
    %108 = arith.mulf %103, %107 : vector<1x64xf32>
    %109 = vector.extract_strided_slice %6 {offsets = [5, 0], sizes = [1, 256], strides = [1, 1]} : vector<8x256xf32> to vector<1x256xf32>
    %110 = vector.extract_strided_slice %8 {offsets = [2, 0], sizes = [1, 256], strides = [1, 1]} : vector<8x256xf32> to vector<1x256xf32>
    %111 = arith.addf %109, %110 : vector<1x256xf32>
    %cst_19 = arith.constant dense<0.000000e+00> : vector<1x256xf32>
    %112 = tpu.matmul %108, %1, %cst_19 {dimension_numbers = #tpu.dot_dimension_numbers<[1], [0], [0], [1], [0, 0, 1, 1], [], []>} : vector<1x64xf32>, vector<64x256xf32>, vector<1x256xf32> -> vector<1x256xf32>
    %113 = arith.addf %111, %112 : vector<1x256xf32>
    %114 = vector.extract_strided_slice %113 {offsets = [0, 0], sizes = [1, 192], strides = [1, 1]} : vector<1x256xf32> to vector<1x192xf32>
    %115 = arith.negf %114 : vector<1x192xf32>
    %116 = math.exp %115 : vector<1x192xf32>
    %cst_20 = arith.constant 1.000000e+00 : f32
    %117 = vector.broadcast %cst_20 : f32 to vector<1x192xf32>
    %118 = arith.addf %117, %116 : vector<1x192xf32>
    %119 = arith.divf %117, %118 : vector<1x192xf32>
    %120 = vector.extract_strided_slice %113 {offsets = [0, 192], sizes = [1, 64], strides = [1, 1]} : vector<1x256xf32> to vector<1x64xf32>
    %121 = math.tanh %120 : vector<1x64xf32>
    %122 = vector.extract_strided_slice %119 {offsets = [0, 0], sizes = [1, 64], strides = [1, 1]} : vector<1x192xf32> to vector<1x64xf32>
    %123 = vector.extract_strided_slice %119 {offsets = [0, 64], sizes = [1, 64], strides = [1, 1]} : vector<1x192xf32> to vector<1x64xf32>
    %124 = vector.extract_strided_slice %119 {offsets = [0, 128], sizes = [1, 64], strides = [1, 1]} : vector<1x192xf32> to vector<1x64xf32>
    %125 = arith.mulf %123, %106 : vector<1x64xf32>
    %126 = arith.mulf %122, %121 : vector<1x64xf32>
    %127 = arith.addf %125, %126 : vector<1x64xf32>
    %128 = math.tanh %127 : vector<1x64xf32>
    %129 = arith.mulf %124, %128 : vector<1x64xf32>
    %130 = vector.extract_strided_slice %6 {offsets = [6, 0], sizes = [1, 256], strides = [1, 1]} : vector<8x256xf32> to vector<1x256xf32>
    %131 = vector.extract_strided_slice %8 {offsets = [1, 0], sizes = [1, 256], strides = [1, 1]} : vector<8x256xf32> to vector<1x256xf32>
    %132 = arith.addf %130, %131 : vector<1x256xf32>
    %cst_21 = arith.constant dense<0.000000e+00> : vector<1x256xf32>
    %133 = tpu.matmul %129, %1, %cst_21 {dimension_numbers = #tpu.dot_dimension_numbers<[1], [0], [0], [1], [0, 0, 1, 1], [], []>} : vector<1x64xf32>, vector<64x256xf32>, vector<1x256xf32> -> vector<1x256xf32>
    %134 = arith.addf %132, %133 : vector<1x256xf32>
    %135 = vector.extract_strided_slice %134 {offsets = [0, 0], sizes = [1, 192], strides = [1, 1]} : vector<1x256xf32> to vector<1x192xf32>
    %136 = arith.negf %135 : vector<1x192xf32>
    %137 = math.exp %136 : vector<1x192xf32>
    %cst_22 = arith.constant 1.000000e+00 : f32
    %138 = vector.broadcast %cst_22 : f32 to vector<1x192xf32>
    %139 = arith.addf %138, %137 : vector<1x192xf32>
    %140 = arith.divf %138, %139 : vector<1x192xf32>
    %141 = vector.extract_strided_slice %134 {offsets = [0, 192], sizes = [1, 64], strides = [1, 1]} : vector<1x256xf32> to vector<1x64xf32>
    %142 = math.tanh %141 : vector<1x64xf32>
    %143 = vector.extract_strided_slice %140 {offsets = [0, 0], sizes = [1, 64], strides = [1, 1]} : vector<1x192xf32> to vector<1x64xf32>
    %144 = vector.extract_strided_slice %140 {offsets = [0, 64], sizes = [1, 64], strides = [1, 1]} : vector<1x192xf32> to vector<1x64xf32>
    %145 = vector.extract_strided_slice %140 {offsets = [0, 128], sizes = [1, 64], strides = [1, 1]} : vector<1x192xf32> to vector<1x64xf32>
    %146 = arith.mulf %144, %127 : vector<1x64xf32>
    %147 = arith.mulf %143, %142 : vector<1x64xf32>
    %148 = arith.addf %146, %147 : vector<1x64xf32>
    %149 = math.tanh %148 : vector<1x64xf32>
    %150 = arith.mulf %145, %149 : vector<1x64xf32>
    %151 = vector.extract_strided_slice %6 {offsets = [7, 0], sizes = [1, 256], strides = [1, 1]} : vector<8x256xf32> to vector<1x256xf32>
    %152 = vector.extract_strided_slice %8 {offsets = [0, 0], sizes = [1, 256], strides = [1, 1]} : vector<8x256xf32> to vector<1x256xf32>
    %153 = arith.addf %151, %152 : vector<1x256xf32>
    %cst_23 = arith.constant dense<0.000000e+00> : vector<1x256xf32>
    %154 = tpu.matmul %150, %1, %cst_23 {dimension_numbers = #tpu.dot_dimension_numbers<[1], [0], [0], [1], [0, 0, 1, 1], [], []>} : vector<1x64xf32>, vector<64x256xf32>, vector<1x256xf32> -> vector<1x256xf32>
    %155 = arith.addf %153, %154 : vector<1x256xf32>
    %156 = vector.extract_strided_slice %155 {offsets = [0, 0], sizes = [1, 192], strides = [1, 1]} : vector<1x256xf32> to vector<1x192xf32>
    %157 = arith.negf %156 : vector<1x192xf32>
    %158 = math.exp %157 : vector<1x192xf32>
    %cst_24 = arith.constant 1.000000e+00 : f32
    %159 = vector.broadcast %cst_24 : f32 to vector<1x192xf32>
    %160 = arith.addf %159, %158 : vector<1x192xf32>
    %161 = arith.divf %159, %160 : vector<1x192xf32>
    %162 = vector.extract_strided_slice %155 {offsets = [0, 192], sizes = [1, 64], strides = [1, 1]} : vector<1x256xf32> to vector<1x64xf32>
    %163 = math.tanh %162 : vector<1x64xf32>
    %164 = vector.extract_strided_slice %161 {offsets = [0, 0], sizes = [1, 64], strides = [1, 1]} : vector<1x192xf32> to vector<1x64xf32>
    %165 = vector.extract_strided_slice %161 {offsets = [0, 64], sizes = [1, 64], strides = [1, 1]} : vector<1x192xf32> to vector<1x64xf32>
    %166 = vector.extract_strided_slice %161 {offsets = [0, 128], sizes = [1, 64], strides = [1, 1]} : vector<1x192xf32> to vector<1x64xf32>
    %167 = arith.mulf %165, %148 : vector<1x64xf32>
    %168 = arith.mulf %164, %163 : vector<1x64xf32>
    %169 = arith.addf %167, %168 : vector<1x64xf32>
    %170 = math.tanh %169 : vector<1x64xf32>
    %171 = arith.mulf %166, %170 : vector<1x64xf32>
    %c0_25 = arith.constant 0 : index
    %c0_26 = arith.constant 0 : index
    %172 = vector.load %arg5[%c0_25, %c0_26] : memref<64x128xf32, #tpu.memory_space<vmem>>, vector<64x128xf32>
    %cst_27 = arith.constant dense<0.000000e+00> : vector<1x128xf32>
    %173 = tpu.matmul %171, %172, %cst_27 {dimension_numbers = #tpu.dot_dimension_numbers<[1], [0], [0], [1], [0, 0, 1, 1], [], []>} : vector<1x64xf32>, vector<64x128xf32>, vector<1x128xf32> -> vector<1x128xf32>
    %c0_28 = arith.constant 0 : index
    %c0_29 = arith.constant 0 : index
    %174 = vector.load %arg6[%c0_28, %c0_29] : memref<1x128xf32, #tpu.memory_space<vmem>>, vector<1x128xf32>
    %175 = arith.addf %173, %174 : vector<1x128xf32>
    %c0_30 = arith.constant 0 : index
    %c0_31 = arith.constant 0 : index
    %176 = vector.load %arg7[%c0_30, %c0_31] : memref<1x128xf32, #tpu.memory_space<vmem>>, vector<1x128xf32>
    tpu.vector_store %arg7[%c0_30, %c0_31], %175 {strides = array<i32>} : memref<1x128xf32, #tpu.memory_space<vmem>>, vector<1x128xf32>,
    return
  }
}

</mosaic_0001>

<bundles_post_ra>
// kernel: tpu_custom_call.1
= control target key start
LH: loop header
LB: loop body
LE: loop exit
PB: predicated region body
PF: predicated region fallthrough
CT: control target
= control target key end

     0   :  { %12 = vsyncpa [#allocation3], 0  ;;  %s1960_s0 = inlined_call_operand.hbm [shape: f32[8,16], index: 0, kind: input, shape index: {}]   ;;  %s1961_s1 = inlined_call_operand.hbm [shape: f32[16,256], index: 1, kind: input, shape index: {}]   ;;  %s1962_s2 = inlined_call_operand.hbm [shape: f32[16,256], index: 2, kind: input, shape index: {}]   ;;  %s1963_s3 = inlined_call_operand.hbm [shape: f32[64,256], index: 3, kind: input, shape index: {}]   ;;  %s1964_s4 = inlined_call_operand.vmem [shape: f32[1,256], index: 4, kind: input, shape index: {}]   ;;  %s1965_s5 = inlined_call_operand.hbm [shape: f32[64,128], index: 5, kind: input, shape index: {}]   ;;  %s1966_s6 = inlined_call_operand.vmem [shape: f32[1,128], index: 6, kind: input, shape index: {}]   ;;  %s1967_s7 = inlined_call_operand.hbm [shape: f32[1,128], index: 7, kind: output, shape index: {}]  }
   0x1   :  { %13 = vsyncpa [#allocation6], 0 }
   0x2   :  { %14 = vsyncpa [#allocation9], 0 }
   0x3   :  { %15 = vsyncpa [#allocation4], 0  ;;  %s1673_s24 = smov [#allocation5]   ;;  %s1533_s28 = scalar_lea.hbm %s1961_s1, 512 }
   0x4   :  { %s31_s25 = sshll.u32 %s1673_s24, 4  ;;  %p1534_p0 = scmp.ne.s32.totalorder %s1961_s1, %s1533_s28  ;;  %s32_s25 = int_to_ptr.vmem [resolvable:$true] %s31_s25 }
   0x5   :  { %p1537_p1 = scmp.lt.u32.totalorder %s1533_s28, %s1961_s1 }
   0x7   :  { %p1539_p2 = pnand %p1537_p1, %p1534_p0 }
   0x9   :  { %1542 = shalt.err (!%p1539_p2)
}
   0xa   :  { %s1543_s10 = scalar_lea.vmem %s32_s25, 512  ;;  %p1548_p4 = scmp.lt.s32.totalorder %s32_s25, %s32_s25 }
   0xb   :  { %p1544_p3 = scmp.ne.s32.totalorder %s32_s25, %s1543_s10  ;;  %p1549_p5 = scmp.lt.s32.totalorder %s1543_s10, %s1543_s10 }
   0xd   :  { %p1550_p6 = por %p1549_p5, %p1548_p4 }
   0xf   :  { %p1551_p7 = pnand %p1550_p6, %p1544_p3 }
  0x11   :  { %1554 = shalt.err (!%p1551_p7)
}
  0x12   :  { %s1674_s11 = smov 256   ;;  %s1675_s12 = smov 16  }
  0x13   :  { %37 = dma.hbm_to_vmem [thread:$0]  %s1961_s1, 512, %s32_s25, [#allocation6], %s1674_s11, %s1674_s11, %s1675_s12  }
  0x14   :  { %s1676_s15 = smov [#allocation8]   ;;  %s1677_s17 = smov [#allocation2]  }
  0x15   :  { %s55_s16 = sshll.u32 %s1676_s15, 4  ;;  %s22_s18 = sshll.u32 %s1677_s17, 4  ;;  %s56_s16 = int_to_ptr.vmem [resolvable:$true] %s55_s16  ;;  %s23_s18 = int_to_ptr.vmem [resolvable:$true] %s22_s18 }
  0x16   :  { %s1555_s21 = scalar_lea.hbm %s1963_s3, 2048 }
  0x17   :  { %p1556_p8 = scmp.ne.s32.totalorder %s1963_s3, %s1555_s21  ;;  %p1559_p9 = scmp.lt.u32.totalorder %s1555_s21, %s1963_s3 }
  0x19   :  { %p1561_p10 = pnand %p1559_p9, %p1556_p8 }
  0x1b   :  { %1564 = shalt.err (!%p1561_p10)
}
  0x1c   :  { %s1565_s1 = scalar_lea.vmem %s56_s16, 2048  ;;  %p1570_p12 = scmp.lt.s32.totalorder %s56_s16, %s56_s16 }
  0x1d   :  { %p1566_p11 = scmp.ne.s32.totalorder %s56_s16, %s1565_s1  ;;  %p1571_p13 = scmp.lt.s32.totalorder %s1565_s1, %s1565_s1 }
  0x1f   :  { %p1572_p0 = por %p1571_p13, %p1570_p12 }
  0x21   :  { %p1573_p1 = pnand %p1572_p0, %p1566_p11 }
  0x23   :  { %1576 = shalt.err (!%p1573_p1)
}
  0x24   :  { %61 = dma.hbm_to_vmem [thread:$0]  %s1963_s3, 2048, %s56_s16, [#allocation9], %s1674_s11, %s1674_s11, %s1675_s12  }
  0x25   :  { %s1577_s30 = scalar_lea.hbm %s1960_s0, 128 }
  0x26   :  { %p1578_p2 = scmp.ne.s32.totalorder %s1960_s0, %s1577_s30  ;;  %p1581_p3 = scmp.lt.u32.totalorder %s1577_s30, %s1960_s0 }
  0x28   :  { %p1583_p4 = pnand %p1581_p3, %p1578_p2 }
  0x2a   :  { %1586 = shalt.err (!%p1583_p4)
}
  0x2b   :  { %s1587_s14 = scalar_lea.vmem %s23_s18, 128  ;;  %p1592_p6 = scmp.lt.s32.totalorder %s23_s18, %s23_s18 }
  0x2c   :  { %p1588_p5 = scmp.ne.s32.totalorder %s23_s18, %s1587_s14  ;;  %p1593_p7 = scmp.lt.s32.totalorder %s1587_s14, %s1587_s14 }
  0x2e   :  { %p1594_p8 = por %p1593_p7, %p1592_p6 }
  0x30   :  { %p1595_p9 = pnand %p1594_p8, %p1588_p5 }
  0x32   :  { %1598 = shalt.err (!%p1595_p9)
}
  0x33   :  { %25 = dma.hbm_to_vmem [thread:$0]  %s1960_s0, 128, %s23_s18, [#allocation3]  }
  0x34   :  { %s1678_s16 = smov [#allocation7]   ;;  %s1679_s19 = smov [#allocation10]  }
  0x35   :  { %s43_s17 = sshll.u32 %s1678_s16, 4  ;;  %s69_s20 = sshll.u32 %s1679_s19, 4  ;;  %s44_s17 = int_to_ptr.vmem [resolvable:$true] %s43_s17  ;;  %s70_s20 = int_to_ptr.vmem [resolvable:$true] %s69_s20 }
  0x36   :  { %s1599_s23 = scalar_lea.hbm %s1962_s2, 512 }
  0x37   :  { %p1600_p10 = scmp.ne.s32.totalorder %s1962_s2, %s1599_s23  ;;  %p1603_p11 = scmp.lt.u32.totalorder %s1599_s23, %s1962_s2 }
  0x39   :  { %p1605_p12 = pnand %p1603_p11, %p1600_p10 }
  0x3b   :  { %1608 = shalt.err (!%p1605_p12)
}
  0x3c   :  { %s1609_s0 = scalar_lea.vmem %s44_s17, 512  ;;  %p1614_p0 = scmp.lt.s32.totalorder %s44_s17, %s44_s17 }
  0x3d   :  { %p1610_p13 = scmp.ne.s32.totalorder %s44_s17, %s1609_s0  ;;  %p1615_p1 = scmp.lt.s32.totalorder %s1609_s0, %s1609_s0 }
  0x3f   :  { %p1616_p2 = por %p1615_p1, %p1614_p0 }
  0x41   :  { %p1617_p3 = pnand %p1616_p2, %p1610_p13 }
  0x43   :  { %1620 = shalt.err (!%p1617_p3)
}
  0x44   :  { %49 = dma.hbm_to_vmem [thread:$0]  %s1962_s2, 512, %s44_s17, [#allocation6], %s1674_s11, %s1674_s11, %s1675_s12  }
  0x45   :  { %s1621_s30 = scalar_lea.hbm %s1965_s5, 1024 }
  0x46   :  { %p1622_p4 = scmp.ne.s32.totalorder %s1965_s5, %s1621_s30  ;;  %p1625_p5 = scmp.lt.u32.totalorder %s1621_s30, %s1965_s5 }
  0x48   :  { %p1627_p6 = pnand %p1625_p5, %p1622_p4 }
  0x4a   :  { %1630 = shalt.err (!%p1627_p6)
}
  0x4b   :  { %s1631_s14 = scalar_lea.vmem %s70_s20, 1024  ;;  %p1636_p8 = scmp.lt.s32.totalorder %s70_s20, %s70_s20 }
  0x4c   :  { %p1632_p7 = scmp.ne.s32.totalorder %s70_s20, %s1631_s14  ;;  %p1637_p9 = scmp.lt.s32.totalorder %s1631_s14, %s1631_s14 }
  0x4e   :  { %p1638_p10 = por %p1637_p9, %p1636_p8 }
  0x50   :  { %p1639_p11 = pnand %p1638_p10, %p1632_p7 }
  0x52   :  { %1642 = shalt.err (!%p1639_p11)
}
  0x53   :  { %s1680_s2 = smov 128   ;;  %s1681_s11 = smov 8  }
  0x54   :  { %75 = dma.hbm_to_vmem [thread:$0]  %s1965_s5, 1024, %s70_s20, [#allocation9], %s1680_s2, %s1680_s2, %s1681_s11  }
  0x55   :  { %1665 = dma.done.wait [#allocation3], 128  }
  0x56   :  { %1666 = vsyncadd [#allocation3], 4294967168 }
  0x57   :  { %1667 = dma.done.wait [#allocation6], 1024  }
  0x58   :  { %1668 = vsyncadd [#allocation6], 4294966272 }
  0x59   :  { %1669 = dma.done.wait [#allocation9], 3072  }
  0x5a   :  { %1670 = vsyncadd [#allocation9], 4294964224  ;;  %v1682_v0 = vmov 0.0   ;;  %v111_v1 = vld [vmem:[#allocation5 + $0x8] sm:$0xff]  ;;  %v113_v2 = vld [vmem:[#allocation5 + $0x18] sm:$0xff]  ;;  %vm126_vm0 = vcmask 130048   ;;  %v116_v17 = vlaneseq }
  0x5b   :  { %194 = vmatprep.mubr.f32.mxu0 %v1682_v0  ;;  %269 = vmatprep.mubr.f32.mxu1 %v1682_v0  ;;  %v202_v3 = vld [vmem:[#allocation7 + $0x8] sm:$0xff]  ;;  %v1291_v4 = vpack.c.bf16 %v113_v2, %v111_v1  ;;  %v204_v5 = vld [vmem:[#allocation7 + $0x18] sm:$0xff]  ;;  %v110_v6 = vld [vmem:[#allocation5] sm:$0xff]  ;;  %vm310_vm1 = vcmask 523264   ;;  %vm1685_vm2 = vmmov 0   ;;  %s1686_s19 = smov [#allocation11]  }
  0x5c   :  { %v112_v7 = vld [vmem:[#allocation5 + $0x10] sm:$0xff]  ;;  %v1295_v8 = vpack.c.bf16 %v204_v5, %v202_v3  ;;  %v201_v10 = vld [vmem:[#allocation7] sm:$0xff]  ;;  %v93_v13 = vld [vmem:[#allocation2] sm:$0xff]  ;;  %v117_v18 = vshrl.u32 %v116_v17, 7  ;;  %s1226_s20 = sshll.u32 %s1686_s19, 4  ;;  %s1227_s20 = int_to_ptr.vmem [resolvable:$true] %s1226_s20 }
  0x5d   :  { %v1293_v9 = vpack.c.bf16 %v112_v7, %v110_v6  ;;  %v203_v11 = vld [vmem:[#allocation7 + $0x10] sm:$0xff]  ;;  %1292 = vmatprep.subr.bf16.mxu0 %v1291_v4  ;;  %v95_v14 = vld [vmem:[#allocation8 + $0x8] sm:$0xff]  ;;  %v97_v15 = vld [vmem:[#allocation8 + $0x18] sm:$0xff]  ;;  %s1643_s21 = scalar_lea.vmem %s1227_s20, 16  ;;  %s1647_s22 = scalar_lea.vmem %s1227_s20, 32 }
  0x5e   :  { %v1297_v12 = vpack.c.bf16 %v203_v11, %v201_v10  ;;  %1296 = vmatprep.subr.bf16.mxu1 %v1295_v8  ;;  %v1800_v16 = vpack.c.bf16 %v97_v15, %v95_v14  ;;  %v118_v19 = vsub.s32 0, %v117_v18  ;;  %v114_v20 = vld [vmem:[%s1964_s4] sm:$0x3]  ;;  %v122_v21 = vsub.s32 1, %v117_v18  ;;  %v94_v37 = vld [vmem:[#allocation8] sm:$0xff]  ;;  %v96_v38 = vld [vmem:[#allocation8 + $0x10] sm:$0xff]  ;;  %p1644_p12 = scmp.ne.s32.totalorder %s1227_s20, %s1643_s21  ;;  %p1648_p13 = scmp.lt.s32.totalorder %s1227_s20, %s1227_s20 }
  0x5f   :  { %1294 = vmatpush1.bf16.msra.mxu0 %v1293_v9  ;;  %v1809_v41 = vpack.c.bf16 %v96_v38, %v94_v37  ;;  %v99_v47 = vld [vmem:[#allocation8 + $0x28] sm:$0xff]  ;;  %v101_v48 = vld [vmem:[#allocation8 + $0x38] sm:$0xff]  ;;  %v98_v52 = vld [vmem:[#allocation8 + $0x20] sm:$0xff]  ;;  %s1683_s4 = smov 64   ;;  %p1649_p0 = scmp.lt.s32.totalorder %s1647_s22, %s1643_s21 }
  0x60   :  { %1298 = vmatpush1.bf16.msra.mxu1 %v1297_v12  ;;  %1300 = vmatprep.subr.bf16.mxu0 %v1800_v16  ;;  %v119_v22 = vrot.slane %v114_v20, %v118_v19  ;;  %v123_v23 = vrot.slane %v114_v20, %v122_v21  ;;  %v1828_v51 = vpack.c.bf16 %v101_v48, %v99_v47  ;;  %v100_v53 = vld [vmem:[#allocation8 + $0x30] sm:$0xff]  ;;  %v103_v55 = vld [vmem:[#allocation8 + $0x48] sm:$0xff]  ;;  %v105_v56 = vld [vmem:[#allocation8 + $0x58] sm:$0xff] }
  0x61   :  { %1316 = vmatprep.subr.bf16.mxu1 %v1800_v16  ;;  %v1830_v54 = vpack.c.bf16 %v100_v53, %v98_v52  ;;  %v102_v57 = vld [vmem:[#allocation8 + $0x40] sm:$0xff]  ;;  %v1835_v58 = vpack.c.bf16 %v105_v56, %v103_v55  ;;  %v104_v59 = vld [vmem:[#allocation8 + $0x50] sm:$0xff]  ;;  %v107_v60 = vld [vmem:[#allocation8 + $0x68] sm:$0xff]  ;;  %p1650_p1 = por %p1649_p0, %p1648_p13 }
  0x62   :  { %1237 = vmatmul.mubr.msk.f32.vlgmr.msra.gmra.mrb[0].mxu0 %vm126_vm0, %v93_v13  ;;  %v109_v61 = vld [vmem:[#allocation8 + $0x78] sm:$0xff]  ;;  %v1838_v62 = vpack.c.bf16 %v104_v59, %v102_v57  ;;  %v106_v1 = vld [vmem:[#allocation8 + $0x60] sm:$0xff]  ;;  %v108_v2 = vld [vmem:[#allocation8 + $0x70] sm:$0xff] }
  0x63   :  { %1238 = vmatmul.mubr.msk.f32.vlgmr.msra.gmra.mrb[0].mxu1 %vm126_vm0, %v93_v13  ;;  %378 = vmatprep.mubr.f32.mxu0 %v1682_v0  ;;  %v1840_v63 = vpack.c.bf16 %v109_v61, %v107_v60  ;;  %v1845_v3 = vpack.c.bf16 %v108_v2, %v106_v1  ;;  %p1651_p2 = pnand %p1650_p1, %p1644_p12 }
  0x64   :  { %502 = vmatprep.mubr.f32.mxu1 %v1682_v0  ;;  %1302 = vmatpush1.bf16.msra.mxu0 %v1809_v41 }
  0x65   :  { %1318 = vmatpush1.bf16.msra.mxu1 %v1809_v41  ;;  %1304 = vmatprep.subr.bf16.mxu0 %v1828_v51 }
  0x66   :  { %1320 = vmatprep.subr.bf16.mxu1 %v1828_v51 }
  0x68   :  { %1306 = vmatpush1.bf16.msra.mxu0 %v1830_v54 }
  0x69   :  { %1322 = vmatpush1.bf16.msra.mxu1 %v1830_v54  ;;  %1308 = vmatprep.subr.bf16.mxu0 %v1835_v58 }
  0x6a   :  { %1324 = vmatprep.subr.bf16.mxu1 %v1835_v58 }
  0x6c   :  { %1310 = vmatpush1.bf16.msra.mxu0 %v1838_v62 }
  0x6d   :  { %1326 = vmatpush1.bf16.msra.mxu1 %v1838_v62  ;;  %1312 = vmatprep.subr.bf16.mxu0 %v1840_v63 }
  0x6e   :  { %1328 = vmatprep.subr.bf16.mxu1 %v1840_v63 }
  0x70   :  { %1314 = vmatpush1.bf16.msra.mxu0 %v1845_v3 }
  0x71   :  { %1330 = vmatpush1.bf16.msra.mxu1 %v1845_v3  ;;  %1332 = vmatprep.subr.bf16.mxu0 %v1800_v16 }
  0x72   :  { %1348 = vmatprep.subr.bf16.mxu1 %v1800_v16 }
 0x135   :  { %v196_v24 = vpop.f32.mrb[0].mxu0 }
 0x136   :  { %v197_v25 = vadd.f32 %v196_v24, %v119_v22  ;;  %v271_v26 = vpop.f32.mrb[0].mxu1  ;;  %v198_v27 = vpop.f32.mrb[1].mxu0 }
 0x137   :  { %v278_v28 = vrot.slane %v271_v26, 7  ;;  %v304_v29 = vrot.slane %v271_v26, 5  ;;  %v428_v30 = vrot.slane %v271_v26, 3  ;;  %v550_v31 = vrot.slane %v271_v26, 1  ;;  %v273_v32 = vpop.f32.mrb[1].mxu1 }
 0x138   :  { %v199_v33 = vadd.f32 %v198_v27, %v123_v23  ;;  %v279_v34 = vrot.slane %v273_v32, 7  ;;  %v305_v35 = vrot.slane %v273_v32, 5  ;;  %v429_v36 = vrot.slane %v273_v32, 3 }
 0x139   :  { %v1807_v39 = vadd.f32 %v278_v28, %v197_v25  ;;  %v551_v40 = vrot.slane %v273_v32, 1  ;;  %v1811_v42 = vadd.f32 %v304_v29, %v197_v25  ;;  %v1817_v45 = vadd.f32 %v428_v30, %v197_v25 }
 0x13a   :  { %v1813_v43 = vadd.f32 %v279_v34, %v199_v33  ;;  %v1815_v44 = vadd.f32 %v305_v35, %v199_v33  ;;  %v1819_v46 = vadd.f32 %v429_v36, %v199_v33  ;;  %v1823_v49 = vadd.f32 %v550_v31, %v197_v25 }
 0x13b   :  { %v1825_v50 = vadd.f32 %v551_v40, %v199_v33  ;;  %v1239_v5 = vmul.f32 -1.442695, %v1807_v39 }
 0x13c   :  { %1437 = vtanh.f32 %v1813_v43  ;;  %v1240_v6 = vmul.f32 -1.442695, %v1813_v43 }
 0x13d   :  { %1439 = vpow2.f32 %v1239_v5 }
 0x13e   :  { %1441 = vpow2.f32 %v1240_v6 }
 0x146   :  { %v1438_v4 = vpop.eup %1437 }
 0x147   :  { %298 = vrot.lane.b32.xlu0 %v1438_v4, %s1683_s4  ;;  %v1440_v7 = vpop.eup %1439 }
 0x148   :  { %v290_v8 = vadd.f32 1.0, %v1440_v7  ;;  %v1442_v9 = vpop.eup %1441 }
 0x149   :  { %v291_v10 = vadd.f32 1.0, %v1442_v9 }
 0x14a   :  { %1443 = vrcp.f32 %v290_v8 }
 0x14b   :  { %1445 = vrcp.f32 %v291_v10 }
 0x154   :  { %v1444_v11 = vpop.eup %1443 }
 0x155   :  { %v1446_v15 = vpop.eup %1445 }
 0x1b9   :  { %v299_v12 = vpop.permute.xlu0 %298 }
 0x1ba   :  { %v301_v13 = vmul.f32 %v1444_v11, %v299_v12 }
 0x1bc   :  { %1447 = vtanh.f32 %v301_v13  ;;  %v407_v14 = vrot.slane %v301_v13, 7 }
 0x1be   :  { %408 = vrot.lane.b32.xlu1 %v407_v14, %s1683_s4 }
 0x1c6   :  { %v1448_v17 = vpop.eup %1447 }
 0x1c7   :  { %v303_v18 = vmul.f32 %v1448_v17, %v1446_v15 }
 0x1c9   :  { %1241 = vmatmul.mubr.msk.f32.vlgmr.msra.gmra.mrb[2].mxu0 %vm310_vm1, %v303_v18 }
 0x1ca   :  { %1334 = vmatpush1.bf16.msra.mxu0 %v1809_v41  ;;  %624 = vmatprep.mubr.f32.mxu0 %v1682_v0 }
 0x1cb   :  { %1336 = vmatprep.subr.bf16.mxu0 %v1828_v51 }
 0x1ce   :  { %1338 = vmatpush1.bf16.msra.mxu0 %v1830_v54 }
 0x1cf   :  { %1340 = vmatprep.subr.bf16.mxu0 %v1835_v58 }
 0x1d2   :  { %1342 = vmatpush1.bf16.msra.mxu0 %v1838_v62 }
 0x1d3   :  { %1344 = vmatprep.subr.bf16.mxu0 %v1840_v63 }
 0x1d6   :  { %1346 = vmatpush1.bf16.msra.mxu0 %v1845_v3 }
 0x1d7   :  { %1364 = vmatprep.subr.bf16.mxu0 %v1800_v16 }
 0x230   :  { %v409_v32 = vpop.permute.xlu1 %408 }
 0x29c   :  { %v380_v19 = vpop.f32.mrb[2].mxu0 }
 0x29d   :  { %v382_v20 = vpop.f32.mrb[3].mxu0  ;;  %v387_v24 = vrot.slane %v380_v19, 7 }
 0x29e   :  { %v388_v21 = vrot.slane %v382_v20, 7 }
 0x29f   :  { %v391_v25 = vadd.f32 %v387_v24, %v1811_v42 }
 0x2a0   :  { %v392_v22 = vadd.f32 %v388_v21, %v1815_v44 }
 0x2a1   :  { %v1242_v26 = vmul.f32 -1.442695, %v391_v25 }
 0x2a2   :  { %1449 = vtanh.f32 %v392_v22  ;;  %v1243_v37 = vmul.f32 -1.442695, %v392_v22 }
 0x2a3   :  { %1451 = vpow2.f32 %v1242_v26 }
 0x2ac   :  { %v1450_v23 = vpop.eup %1449 }
 0x2ad   :  { %413 = vrot.lane.b32.xlu0 %v1450_v23, %s1683_s4  ;;  %v1452_v27 = vpop.eup %1451 }
 0x2ae   :  { %v399_v28 = vadd.f32 1.0, %v1452_v27 }
 0x2b0   :  { %1453 = vrcp.f32 %v399_v28 }
 0x2ba   :  { %v1454_v29 = vpop.eup %1453 }
 0x2bb   :  { %v411_v33 = vmul.f32 %v1454_v29, %v409_v32 }
 0x31f   :  { %v414_v30 = vpop.permute.xlu0 %413 }
 0x320   :  { %v416_v31 = vmul.f32 %v1454_v29, %v414_v30 }
 0x322   :  { %418 = vrot.lane.b32.xlu1 %v416_v31, %s1683_s4 }
 0x394   :  { %v419_v34 = vpop.permute.xlu1 %418 }
 0x395   :  { %v421_v35 = vadd.f32 %v419_v34, %v411_v33 }
 0x397   :  { %1455 = vtanh.f32 %v421_v35  ;;  %v531_v9 = vrot.slane %v421_v35, 7 }
 0x398   :  { %1457 = vpow2.f32 %v1243_v37 }
 0x3a1   :  { %v1456_v36 = vpop.eup %1455 }
 0x3a2   :  { %424 = vrot.lane.b32.xlu0 %v1456_v36, %s1683_s4  ;;  %v1458_v38 = vpop.eup %1457 }
 0x3a3   :  { %v400_v40 = vadd.f32 1.0, %v1458_v38 }
 0x3a5   :  { %1459 = vrcp.f32 %v400_v40 }
 0x3af   :  { %v1460_v47 = vpop.eup %1459 }
 0x414   :  { %v425_v48 = vpop.permute.xlu0 %424 }
 0x415   :  { %v427_v52 = vmul.f32 %v1460_v47, %v425_v48 }
 0x417   :  { %v435_v53 = vrot.slane %v427_v52, 1 }
 0x419   :  { %1244 = vmatmul.mubr.msk.f32.vlgmr.msra.gmra.mrb[2].mxu1 %vm310_vm1, %v435_v53 }
 0x41a   :  { %1350 = vmatpush1.bf16.msra.mxu1 %v1809_v41  ;;  %740 = vmatprep.mubr.f32.mxu1 %v1682_v0 }
 0x41b   :  { %1352 = vmatprep.subr.bf16.mxu1 %v1828_v51 }
 0x41e   :  { %1354 = vmatpush1.bf16.msra.mxu1 %v1830_v54 }
 0x41f   :  { %1356 = vmatprep.subr.bf16.mxu1 %v1835_v58 }
 0x422   :  { %1358 = vmatpush1.bf16.msra.mxu1 %v1838_v62 }
 0x423   :  { %1360 = vmatprep.subr.bf16.mxu1 %v1840_v63 }
 0x426   :  { %1362 = vmatpush1.bf16.msra.mxu1 %v1845_v3 }
 0x427   :  { %1380 = vmatprep.subr.bf16.mxu1 %v1800_v16 }
 0x4ec   :  { %v504_v55 = vpop.f32.mrb[2].mxu1 }
 0x4ed   :  { %v506_v56 = vpop.f32.mrb[3].mxu1  ;;  %v511_v61 = vrot.slane %v504_v55, 6 }
 0x4ee   :  { %v512_v57 = vrot.slane %v506_v56, 6 }
 0x4ef   :  { %v515_v1 = vadd.f32 %v511_v61, %v1817_v45 }
 0x4f0   :  { %v516_v59 = vadd.f32 %v512_v57, %v1819_v46 }
 0x4f1   :  { %v1245_v2 = vmul.f32 -1.442695, %v515_v1 }
 0x4f2   :  { %1461 = vtanh.f32 %v516_v59  ;;  %v1246_v14 = vmul.f32 -1.442695, %v516_v59 }
 0x4f3   :  { %1463 = vpow2.f32 %v1245_v2 }
 0x4fc   :  { %v1462_v60 = vpop.eup %1461 }
 0x4fd   :  { %535 = vrot.lane.b32.xlu1 %v1462_v60, %s1683_s4  ;;  %v1464_v4 = vpop.eup %1463 }
 0x4fe   :  { %v523_v5 = vadd.f32 1.0, %v1464_v4 }
 0x500   :  { %1465 = vrcp.f32 %v523_v5 }
 0x50a   :  { %v1466_v6 = vpop.eup %1465 }
 0x50b   :  { %v533_v10 = vmul.f32 %v1466_v6, %v531_v9 }
 0x56f   :  { %v536_v7 = vpop.permute.xlu1 %535 }
 0x570   :  { %v538_v8 = vmul.f32 %v1466_v6, %v536_v7 }
 0x572   :  { %540 = vrot.lane.b32.xlu0 %v538_v8, %s1683_s4 }
 0x5e4   :  { %v541_v11 = vpop.permute.xlu0 %540 }
 0x5e5   :  { %v543_v12 = vadd.f32 %v541_v11, %v533_v10 }
 0x5e7   :  { %1467 = vtanh.f32 %v543_v12  ;;  %v653_v34 = vrot.slane %v543_v12, 7 }
 0x5e8   :  { %1469 = vpow2.f32 %v1246_v14 }
 0x5f1   :  { %v1468_v13 = vpop.eup %1467 }
 0x5f2   :  { %546 = vrot.lane.b32.xlu1 %v1468_v13, %s1683_s4  ;;  %v1470_v15 = vpop.eup %1469 }
 0x5f3   :  { %v524_v17 = vadd.f32 1.0, %v1470_v15 }
 0x5f5   :  { %1471 = vrcp.f32 %v524_v17 }
 0x5ff   :  { %v1472_v18 = vpop.eup %1471 }
 0x664   :  { %v547_v19 = vpop.permute.xlu1 %546 }
 0x665   :  { %v549_v20 = vmul.f32 %v1472_v18, %v547_v19 }
 0x667   :  { %v557_v21 = vrot.slane %v549_v20, 2 }
 0x669   :  { %1247 = vmatmul.mubr.msk.f32.vlgmr.msra.gmra.mrb[4].mxu0 %vm310_vm1, %v557_v21 }
 0x66a   :  { %1366 = vmatpush1.bf16.msra.mxu0 %v1809_v41  ;;  %856 = vmatprep.mubr.f32.mxu0 %v1682_v0 }
 0x66b   :  { %1368 = vmatprep.subr.bf16.mxu0 %v1828_v51 }
 0x66e   :  { %1370 = vmatpush1.bf16.msra.mxu0 %v1830_v54 }
 0x66f   :  { %1372 = vmatprep.subr.bf16.mxu0 %v1835_v58 }
 0x672   :  { %1374 = vmatpush1.bf16.msra.mxu0 %v1838_v62 }
 0x673   :  { %1376 = vmatprep.subr.bf16.mxu0 %v1840_v63 }
 0x676   :  { %1378 = vmatpush1.bf16.msra.mxu0 %v1845_v3 }
 0x677   :  { %1396 = vmatprep.subr.bf16.mxu0 %v1800_v16 }
 0x73c   :  { %v626_v22 = vpop.f32.mrb[4].mxu0 }
 0x73d   :  { %v628_v23 = vpop.f32.mrb[5].mxu0  ;;  %v633_v27 = vrot.slane %v626_v22, 5 }
 0x73e   :  { %v634_v24 = vrot.slane %v628_v23, 5 }
 0x73f   :  { %v637_v28 = vadd.f32 %v633_v27, %v1823_v49 }
 0x740   :  { %v638_v25 = vadd.f32 %v634_v24, %v1825_v50 }
 0x741   :  { %v1248_v29 = vmul.f32 -1.442695, %v637_v28 }
 0x742   :  { %1473 = vtanh.f32 %v638_v25  ;;  %v1249_v40 = vmul.f32 -1.442695, %v638_v25 }
 0x743   :  { %1475 = vpow2.f32 %v1248_v29 }
 0x74c   :  { %v1474_v26 = vpop.eup %1473 }
 0x74d   :  { %657 = vrot.lane.b32.xlu0 %v1474_v26, %s1683_s4  ;;  %v1476_v30 = vpop.eup %1475 }
 0x74e   :  { %v645_v31 = vadd.f32 1.0, %v1476_v30 }
 0x750   :  { %1477 = vrcp.f32 %v645_v31 }
 0x75a   :  { %v1478_v32 = vpop.eup %1477 }
 0x75b   :  { %v655_v35 = vmul.f32 %v1478_v32, %v653_v34 }
 0x7bf   :  { %v658_v33 = vpop.permute.xlu0 %657 }
 0x7c0   :  { %v660_v16 = vmul.f32 %v1478_v32, %v658_v33 }
 0x7c2   :  { %662 = vrot.lane.b32.xlu1 %v660_v16, %s1683_s4 }
 0x834   :  { %v663_v36 = vpop.permute.xlu1 %662 }
 0x835   :  { %v665_v37 = vadd.f32 %v663_v36, %v655_v35 }
 0x837   :  { %1479 = vtanh.f32 %v665_v37  ;;  %v769_v11 = vrot.slane %v665_v37, 7 }
 0x838   :  { %1481 = vpow2.f32 %v1249_v40 }
 0x841   :  { %v1480_v38 = vpop.eup %1479 }
 0x842   :  { %668 = vrot.lane.b32.xlu0 %v1480_v38, %s1683_s4  ;;  %v1482_v47 = vpop.eup %1481 }
 0x843   :  { %v646_v48 = vadd.f32 1.0, %v1482_v47 }
 0x845   :  { %1483 = vrcp.f32 %v646_v48 }
 0x84f   :  { %v1484_v52 = vpop.eup %1483 }
 0x8b4   :  { %v669_v53 = vpop.permute.xlu0 %668 }
 0x8b5   :  { %v671_v55 = vmul.f32 %v1484_v52, %v669_v53 }
 0x8b7   :  { %v673_v56 = vrot.slane %v671_v55, 3 }
 0x8b9   :  { %1250 = vmatmul.mubr.msk.f32.vlgmr.msra.gmra.mrb[4].mxu1 %vm310_vm1, %v673_v56 }
 0x8ba   :  { %1382 = vmatpush1.bf16.msra.mxu1 %v1809_v41  ;;  %972 = vmatprep.mubr.f32.mxu1 %v1682_v0 }
 0x8bb   :  { %1384 = vmatprep.subr.bf16.mxu1 %v1828_v51 }
 0x8be   :  { %1386 = vmatpush1.bf16.msra.mxu1 %v1830_v54 }
 0x8bf   :  { %1388 = vmatprep.subr.bf16.mxu1 %v1835_v58 }
 0x8c2   :  { %1390 = vmatpush1.bf16.msra.mxu1 %v1838_v62 }
 0x8c3   :  { %1392 = vmatprep.subr.bf16.mxu1 %v1840_v63 }
 0x8c6   :  { %1394 = vmatpush1.bf16.msra.mxu1 %v1845_v3 }
 0x98c   :  { %v742_v57 = vpop.f32.mrb[4].mxu1 }
 0x98d   :  { %v744_v59 = vpop.f32.mrb[5].mxu1  ;;  %v749_v2 = vrot.slane %v742_v57, 4 }
 0x98e   :  { %v750_v60 = vrot.slane %v744_v59, 4 }
 0x98f   :  { %v753_v4 = vadd.f32 %v749_v2, %v1807_v39 }
 0x990   :  { %v754_v61 = vadd.f32 %v750_v60, %v1813_v43 }
 0x991   :  { %v1251_v5 = vmul.f32 -1.442695, %v753_v4 }
 0x992   :  { %1485 = vtanh.f32 %v754_v61  ;;  %v1252_v15 = vmul.f32 -1.442695, %v754_v61 }
 0x993   :  { %1487 = vpow2.f32 %v1251_v5 }
 0x99c   :  { %v1486_v1 = vpop.eup %1485 }
 0x99d   :  { %773 = vrot.lane.b32.xlu1 %v1486_v1, %s1683_s4  ;;  %v1488_v6 = vpop.eup %1487 }
 0x99e   :  { %v761_v7 = vadd.f32 1.0, %v1488_v6 }
 0x9a0   :  { %1489 = vrcp.f32 %v761_v7 }
 0x9aa   :  { %v1490_v8 = vpop.eup %1489 }
 0x9ab   :  { %v771_v12 = vmul.f32 %v1490_v8, %v769_v11 }
 0xa0f   :  { %v774_v9 = vpop.permute.xlu1 %773 }
 0xa10   :  { %v776_v10 = vmul.f32 %v1490_v8, %v774_v9 }
 0xa12   :  { %778 = vrot.lane.b32.xlu0 %v776_v10, %s1683_s4 }
 0xa84   :  { %v779_v43 = vpop.permute.xlu0 %778 }
 0xa85   :  { %v781_v13 = vadd.f32 %v779_v43, %v771_v12 }
 0xa87   :  { %1491 = vtanh.f32 %v781_v13  ;;  %v885_v28 = vrot.slane %v781_v13, 7 }
 0xa88   :  { %1493 = vpow2.f32 %v1252_v15 }
 0xa91   :  { %v1492_v14 = vpop.eup %1491 }
 0xa92   :  { %784 = vrot.lane.b32.xlu1 %v1492_v14, %s1683_s4  ;;  %v1494_v39 = vpop.eup %1493 }
 0xa93   :  { %v762_v17 = vadd.f32 1.0, %v1494_v39 }
 0xa95   :  { %1495 = vrcp.f32 %v762_v17 }
 0xa9f   :  { %v1496_v18 = vpop.eup %1495 }
 0xb04   :  { %v785_v19 = vpop.permute.xlu1 %784 }
 0xb05   :  { %v787_v20 = vmul.f32 %v1496_v18, %v785_v19 }
 0xb07   :  { %v789_v21 = vrot.slane %v787_v20, 4 }
 0xb09   :  { %1253 = vmatmul.mubr.msk.f32.vlgmr.msra.gmra.mrb[6].mxu0 %vm310_vm1, %v789_v21 }
 0xb0a   :  { %1398 = vmatpush1.bf16.msra.mxu0 %v1809_v41  ;;  %1088 = vmatprep.mubr.f32.mxu0 %v1682_v0 }
 0xb0b   :  { %1400 = vmatprep.subr.bf16.mxu0 %v1828_v51 }
 0xb0e   :  { %1402 = vmatpush1.bf16.msra.mxu0 %v1830_v54 }
 0xb0f   :  { %1404 = vmatprep.subr.bf16.mxu0 %v1835_v58 }
 0xb12   :  { %1406 = vmatpush1.bf16.msra.mxu0 %v1838_v62 }
 0xb13   :  { %1408 = vmatprep.subr.bf16.mxu0 %v1840_v63 }
 0xb16   :  { %1410 = vmatpush1.bf16.msra.mxu0 %v1845_v3 }
 0xbdc   :  { %v858_v22 = vpop.f32.mrb[6].mxu0 }
 0xbdd   :  { %v860_v23 = vpop.f32.mrb[7].mxu0  ;;  %v865_v51 = vrot.slane %v858_v22, 3 }
 0xbde   :  { %v866_v24 = vrot.slane %v860_v23, 3 }
 0xbdf   :  { %v869_v54 = vadd.f32 %v865_v51, %v1811_v42 }
 0xbe0   :  { %v870_v25 = vadd.f32 %v866_v24, %v1815_v44  ;;  %v1136_v24 = vld [vmem:[#allocation10] sm:$0xff] }
 0xbe1   :  { %v1254_v26 = vmul.f32 -1.442695, %v869_v54  ;;  %v1139_v54 = vld [vmem:[#allocation10 + $0x18] sm:$0xff] }
 0xbe2   :  { %1497 = vtanh.f32 %v870_v25  ;;  %v1255_v32 = vmul.f32 -1.442695, %v870_v25  ;;  %v1137_v25 = vld [vmem:[#allocation10 + $0x8] sm:$0xff] }
 0xbe3   :  { %1499 = vpow2.f32 %v1254_v26  ;;  %v1412_v51 = vpack.c.bf16 %v1137_v25, %v1136_v24 }
 0xbec   :  { %v1498_v41 = vpop.eup %1497 }
 0xbed   :  { %889 = vrot.lane.b32.xlu0 %v1498_v41, %s1683_s4  ;;  %v1500_v58 = vpop.eup %1499  ;;  %v1684_v41 = vmov 0.0|0.0  }
 0xbee   :  { %v877_v62 = vadd.f32 1.0, %v1500_v58  ;;  %1411 = vmatprep.subr.bf16.mxu1 %v1684_v41  ;;  %v1141_v58 = vld [vmem:[#allocation10 + $0x28] sm:$0xff] }
 0xbf0   :  { %1501 = vrcp.f32 %v877_v62 }
 0xbfa   :  { %v1502_v63 = vpop.eup %1501 }
 0xbfb   :  { %v887_v29 = vmul.f32 %v1502_v63, %v885_v28 }
 0xc5f   :  { %v890_v27 = vpop.permute.xlu0 %889 }
 0xc60   :  { %v892_v3 = vmul.f32 %v1502_v63, %v890_v27 }
 0xc62   :  { %894 = vrot.lane.b32.xlu1 %v892_v3, %s1683_s4 }
 0xcd4   :  { %v895_v44 = vpop.permute.xlu1 %894 }
 0xcd5   :  { %v897_v30 = vadd.f32 %v895_v44, %v887_v29  ;;  %v1142_v29 = vld [vmem:[#allocation10 + $0x30] sm:$0xff]  ;;  %v1143_v44 = vld [vmem:[#allocation10 + $0x38] sm:$0xff] }
 0xcd7   :  { %1503 = vtanh.f32 %v897_v30  ;;  %v1001_v1 = vrot.slane %v897_v30, 7  ;;  %v1421_v30 = vpack.c.bf16 %v1143_v44, %v1142_v29 }
 0xcd8   :  { %1505 = vpow2.f32 %v1255_v32 }
 0xce1   :  { %v1504_v31 = vpop.eup %1503 }
 0xce2   :  { %900 = vrot.lane.b32.xlu0 %v1504_v31, %s1683_s4  ;;  %v1506_v42 = vpop.eup %1505 }
 0xce3   :  { %v878_v33 = vadd.f32 1.0, %v1506_v42 }
 0xce5   :  { %1507 = vrcp.f32 %v878_v33 }
 0xcef   :  { %v1508_v16 = vpop.eup %1507 }
 0xd54   :  { %v901_v34 = vpop.permute.xlu0 %900 }
 0xd55   :  { %v903_v35 = vmul.f32 %v1508_v16, %v901_v34 }
 0xd57   :  { %v905_v36 = vrot.slane %v903_v35, 5 }
 0xd59   :  { %1256 = vmatmul.mubr.msk.f32.vlgmr.msra.gmra.mrb[6].mxu1 %vm310_vm1, %v905_v36 }
 0xd5a   :  { %1413 = vmatpush3.bf16.msra.mxu1 %v1412_v51  ;;  %1288 = vmatprep.mubr.msk.f32.mxu1 %vm1685_vm2, %v1682_v0 }
 0xd5b   :  { %1414 = vmatprep.subr.bf16.mxu1 %v1684_v41 }
 0xe2c   :  { %v974_v37 = vpop.f32.mrb[6].mxu1 }
 0xe2d   :  { %v976_v38 = vpop.f32.mrb[7].mxu1  ;;  %v981_v52 = vrot.slane %v974_v37, 2  ;;  %v1144_v37 = vld [vmem:[%s1966_s6] sm:$0x1] }
 0xe2e   :  { %v982_v40 = vrot.slane %v976_v38, 2 }
 0xe2f   :  { %v985_v53 = vadd.f32 %v981_v52, %v1817_v45 }
 0xe30   :  { %v986_v47 = vadd.f32 %v982_v40, %v1819_v46 }
 0xe31   :  { %v1257_v55 = vmul.f32 -1.442695, %v985_v53 }
 0xe32   :  { %1509 = vtanh.f32 %v986_v47  ;;  %v1258_v6 = vmul.f32 -1.442695, %v986_v47 }
 0xe33   :  { %1511 = vpow2.f32 %v1257_v55 }
 0xe3c   :  { %v1510_v48 = vpop.eup %1509 }
 0xe3d   :  { %1005 = vrot.lane.b32.xlu1 %v1510_v48, %s1683_s4  ;;  %v1512_v56 = vpop.eup %1511 }
 0xe3e   :  { %v993_v57 = vadd.f32 1.0, %v1512_v56 }
 0xe40   :  { %1513 = vrcp.f32 %v993_v57 }
 0xe4a   :  { %v1514_v59 = vpop.eup %1513 }
 0xe4b   :  { %v1003_v2 = vmul.f32 %v1514_v59, %v1001_v1 }
 0xeaf   :  { %v1006_v60 = vpop.permute.xlu1 %1005 }
 0xeb0   :  { %v1008_v61 = vmul.f32 %v1514_v59, %v1006_v60 }
 0xeb2   :  { %1010 = vrot.lane.b32.xlu0 %v1008_v61, %s1683_s4 }
 0xf24   :  { %v1011_v46 = vpop.permute.xlu0 %1010 }
 0xf25   :  { %v1013_v4 = vadd.f32 %v1011_v46, %v1003_v2 }
 0xf27   :  { %1515 = vtanh.f32 %v1013_v4  ;;  %v1117_v63 = vrot.slane %v1013_v4, 7 }
 0xf28   :  { %1517 = vpow2.f32 %v1258_v6 }
 0xf31   :  { %v1516_v5 = vpop.eup %1515 }
 0xf32   :  { %1016 = vrot.lane.b32.xlu1 %v1516_v5, %s1683_s4  ;;  %v1518_v45 = vpop.eup %1517 }
 0xf33   :  { %v994_v7 = vadd.f32 1.0, %v1518_v45 }
 0xf35   :  { %1519 = vrcp.f32 %v994_v7 }
 0xf3f   :  { %v1520_v8 = vpop.eup %1519 }
 0xfa4   :  { %v1017_v9 = vpop.permute.xlu1 %1016 }
 0xfa5   :  { %v1019_v10 = vmul.f32 %v1520_v8, %v1017_v9 }
 0xfa7   :  { %v1021_v11 = vrot.slane %v1019_v10, 6 }
 0xfa9   :  { %1259 = vmatmul.mubr.msk.f32.vlgmr.msra.gmra.mrb[8].mxu0 %vm310_vm1, %v1021_v11 }
0x107c   :  { %v1090_v12 = vpop.f32.mrb[8].mxu0 }
0x107d   :  { %v1092_v43 = vpop.f32.mrb[9].mxu0  ;;  %v1097_v39 = vrot.slane %v1090_v12, 1 }
0x107e   :  { %v1098_v13 = vrot.slane %v1092_v43, 1 }
0x107f   :  { %v1101_v17 = vadd.f32 %v1097_v39, %v1823_v49  ;;  %v1140_v49 = vld [vmem:[#allocation10 + $0x20] sm:$0xff] }
0x1080   :  { %v1102_v14 = vadd.f32 %v1098_v13, %v1825_v50  ;;  %v1138_v50 = vld [vmem:[#allocation10 + $0x10] sm:$0xff]  ;;  %v1418_v62 = vpack.c.bf16 %v1141_v58, %v1140_v49 }
0x1081   :  { %v1260_v18 = vmul.f32 -1.442695, %v1101_v17  ;;  %v1415_v26 = vpack.c.bf16 %v1139_v54, %v1138_v50 }
0x1082   :  { %1521 = vtanh.f32 %v1102_v14  ;;  %v1261_v32 = vmul.f32 -1.442695, %v1102_v14 }
0x1083   :  { %1523 = vpow2.f32 %v1260_v18  ;;  %1416 = vmatpush3.bf16.msra.mxu1 %v1415_v26 }
0x1084   :  { %1417 = vmatprep.subr.bf16.mxu1 %v1684_v41 }
0x1087   :  { %1419 = vmatpush3.bf16.msra.mxu1 %v1418_v62 }
0x1088   :  { %1420 = vmatprep.subr.bf16.mxu1 %v1684_v41 }
0x108b   :  { %1422 = vmatpush3.bf16.msra.mxu1 %v1421_v30 }
0x108c   :  { %v1522_v15 = vpop.eup %1521 }
0x108d   :  { %1121 = vrot.lane.b32.xlu0 %v1522_v15, %s1683_s4  ;;  %v1524_v19 = vpop.eup %1523 }
0x108e   :  { %v1109_v20 = vadd.f32 1.0, %v1524_v19 }
0x1090   :  { %1525 = vrcp.f32 %v1109_v20 }
0x109a   :  { %v1526_v21 = vpop.eup %1525 }
0x109b   :  { %v1119_v27 = vmul.f32 %v1526_v21, %v1117_v63 }
0x10ff   :  { %v1122_v22 = vpop.permute.xlu0 %1121 }
0x1100   :  { %v1124_v23 = vmul.f32 %v1526_v21, %v1122_v22 }
0x1102   :  { %1126 = vrot.lane.b32.xlu1 %v1124_v23, %s1683_s4 }
0x1174   :  { %v1127_v3 = vpop.permute.xlu1 %1126 }
0x1175   :  { %v1129_v28 = vadd.f32 %v1127_v3, %v1119_v27 }
0x1177   :  { %1527 = vtanh.f32 %v1129_v28 }
0x1178   :  { %1529 = vpow2.f32 %v1261_v32 }
0x1181   :  { %v1528_v31 = vpop.eup %1527 }
0x1182   :  { %1132 = vrot.lane.b32.xlu0 %v1528_v31, %s1683_s4  ;;  %v1530_v42 = vpop.eup %1529 }
0x1183   :  { %v1110_v33 = vadd.f32 1.0, %v1530_v42 }
0x1185   :  { %1531 = vrcp.f32 %v1110_v33 }
0x118f   :  { %v1532_v16 = vpop.eup %1531 }
0x11f4   :  { %v1133_v34 = vpop.permute.xlu0 %1132 }
0x11f5   :  { %v1135_v35 = vmul.f32 %v1532_v16, %v1133_v34 }
0x11f7   :  { %v1146_v36 = vrot.slane %v1135_v35, 7 }
0x11f9   :  { %1289 = vmatmul.mubr.msk.f32.vlgmr.msra.gmra.mrb[8].mxu1 %vm310_vm1, %v1146_v36 }
0x12cc   :  { %v1215_v0 = vpop.f32.mrb[8].mxu1 }
0x12cd   :  { %v1216_v38 = vadd.f32 %v1215_v0, %v1144_v37  ;;  %v1290_v40 = vpop.f32.mrb[9].mxu1 }
0x12cf   :  { %1219 = vst [vmem:[#allocation11] sm:$0x1] %v1216_v38 }
0x12d0   :  { %1654 = shalt.err (!%p1651_p2)
}
0x12d1   :  { %s1655_s26 = scalar_lea.hbm %s1967_s7, 16 }
0x12d2   :  { %p1656_p3 = scmp.ne.s32.totalorder %s1967_s7, %s1655_s26  ;;  %p1659_p4 = scmp.lt.u32.totalorder %s1655_s26, %s1967_s7 }
0x12d4   :  { %p1661_p5 = pnand %p1659_p4, %p1656_p3 }
0x12d6   :  { %1664 = shalt.err (!%p1661_p5)
}
0x12d7   :  { %1229 = dma.vmem_to_hbm [thread:$0]  %s1227_s20, 16, %s1967_s7, [#allocation4]  }
0x12d8   :  { %1671 = dma.done.wait [#allocation4], 16  }
0x12d9   :  { %1672 = vsyncadd [#allocation4], 4294967280 }
0x12da   :  { %1233 = vsyncpa [#allocation3], 1 }
0x12db   :  { %1234 = vsyncpa [#allocation6], 1 }
0x12dc   :  { %1235 = vsyncpa [#allocation9], 1 }
0x12dd   :  { %1236 = vsyncpa [#allocation4], 1 }

</bundles_post_ra>
